<compile_context>
chip_gen: v7x
topology: tpu7x:2x2x1
jax: 0.10.0
libtpu: 0.0.40
codegen_flags: <defaults>
</compile_context>

<pallas_src>
import functools
import math

import jax
import jax.numpy as jnp
from jax.experimental import pallas as pl
from jax.experimental.pallas import tpu as pltpu

NEG_SLOPE = 0.01      # nn.LeakyReLU default
BN_EPS = 1e-5         # nn.BatchNorm1d default
NUM_CLASSES = 2
CLASS_PAD = 128       # lane-dense padded width of the final layer / output store
MIN_TILE = 16         # bf16 activations pack 16 sublanes per vreg
MAX_TILE = 2048       # VMEM-safe tile cap for all generations (incl. v7x 32 MiB scoped)


def _round_up(n, m):
    return ((n + m - 1) // m) * m


# ----------------------------------------------------------------------------- kernel


def dnn_kernel(
    x_ref,
    w1_ref, b1_ref,
    w2_ref, b2_ref,
    w3_ref, b3_ref,
    w4_ref, b4_ref,
    w5_ref, b5_ref,
    o_ref,
):
    def layer(h_bf16, w_ref, b_ref):
        # bf16 MXU matmul, f32 accumulate, f32 fused bias (BN folded), then LeakyReLU applied
        # on the bf16 value that feeds the next dot (single downcast per layer).
        h = jnp.dot(h_bf16, w_ref[...], preferred_element_type=jnp.float32) + b_ref[...]
        h = h.astype(jnp.bfloat16)
        return jnp.where(h >= 0, h, NEG_SLOPE * h)

    h = x_ref[...].astype(jnp.bfloat16)
    h = layer(h, w1_ref, b1_ref)   # ln1 -> (dropout = id) -> bn1 (folded) -> LeakyReLU
    h = layer(h, w2_ref, b2_ref)   # ln2 -> bn2 -> LeakyReLU
    h = layer(h, w3_ref, b3_ref)   # ln3 -> bn3 -> LeakyReLU
    h = layer(h, w4_ref, b4_ref)   # ln4 -> bn4 -> LeakyReLU

    # ln5 (zero-padded 2 -> 128 output lanes) + masked softmax over the first NUM_CLASSES lanes.
    logits = jnp.dot(h, w5_ref[...], preferred_element_type=jnp.float32) + b5_ref[...]
    lane = jax.lax.broadcasted_iota(jnp.int32, logits.shape, 1)
    valid = lane < NUM_CLASSES
    masked = jnp.where(valid, logits, jnp.float32(-1e30))
    m = jnp.max(masked, axis=1, keepdims=True)
    e = jnp.where(valid, jnp.exp(masked - m), 0.0)
    denom = jnp.sum(e, axis=1, keepdims=True)
    # EUP approximate reciprocal (separate bundle slot) instead of a VALU divide; padded lanes
    # store exact 0.  Softmax rows therefore sum to 1 within ~1e-3 relative error.
    probs = e * pl.reciprocal(denom, approx=True)
    o_ref[...] = probs.astype(o_ref.dtype)   # lane-dense bf16 store (half the writeback of f32)


# ----------------------------------------------------------------------------- params


def make_raw_params(key, indim):
    """Deterministic synthetic parameters with the exact PyTorch DNN shapes (f32)."""
    dims = [indim, 64, 128, 256, 512, NUM_CLASSES]
    raw = {}
    keys = iter(jax.random.split(key, 64))
    for layer in range(5):
        fan_in, fan_out = dims[layer], dims[layer + 1]
        bound = 1.0 / math.sqrt(fan_in)
        # stored as (in, out) == PyTorch weight.T
        raw[f"w{layer + 1}"] = jax.random.uniform(
            next(keys), (fan_in, fan_out), jnp.float32, -bound, bound)
        raw[f"b{layer + 1}"] = jax.random.uniform(
            next(keys), (1, fan_out), jnp.float32, -bound, bound)
    for layer in range(1, 5):  # bn1..bn4 on 64,128,256,512 channels
        c = dims[layer]
        raw[f"gamma{layer}"] = 1.0 + 0.1 * jax.random.normal(next(keys), (1, c), jnp.float32)
        raw[f"beta{layer}"] = 0.1 * jax.random.normal(next(keys), (1, c), jnp.float32)
        raw[f"mean{layer}"] = 0.1 * jax.random.normal(next(keys), (1, c), jnp.float32)
        raw[f"var{layer}"] = 1.0 + 0.1 * jax.random.uniform(next(keys), (1, c), jnp.float32)
    return raw


def fold_params(raw):
    """Fold eval-mode BN + bias into each linear; bf16 weights; pad final layer to 128 lanes.

    Note: folding BN scale into columns before the bf16 cast assumes running variances are not
    pathologically small (true here); real checkpoints with near-zero var would need a guard.
    """
    params = {}
    for layer in range(1, 5):
        w, b = raw[f"w{layer}"], raw[f"b{layer}"]
        scale = raw[f"gamma{layer}"] * jax.lax.rsqrt(raw[f"var{layer}"] + BN_EPS)   # (1, C)
        shift = raw[f"beta{layer}"] - raw[f"mean{layer}"] * scale
        params[f"w{layer}"] = (w * scale).astype(jnp.bfloat16)       # fold scale into columns
        params[f"b{layer}"] = b * scale + shift                      # fused bias, f32
    # Final layer: zero-pad 2 -> CLASS_PAD output columns for a lane-dense output store.
    w5, b5 = raw["w5"], raw["b5"]
    w5p = jnp.zeros((w5.shape[0], CLASS_PAD), jnp.float32).at[:, :NUM_CLASSES].set(w5)
    b5p = jnp.zeros((1, CLASS_PAD), jnp.float32).at[:, :NUM_CLASSES].set(b5)
    params["w5"] = w5p.astype(jnp.bfloat16)
    params["b5"] = b5p
    return params


# ----------------------------------------------------------------------------- wrapper


def dnn_forward(x, params, *, block_b=1024):
    """Batch-tiled fused forward.  TB is forced to a multiple of 16 and capped at MAX_TILE."""
    B, indim = x.shape

    # Enforce (not just document) the tiling constraints.
    block_b = min(_round_up(max(int(block_b), MIN_TILE), MIN_TILE), MAX_TILE)
    b_pad = _round_up(B, MIN_TILE)
    TB = min(block_b, b_pad)
    # v7x: ensure >= 2 grid tiles so the "parallel" batch axis shards across both TensorCores.
    if TB >= b_pad and b_pad >= 2 * MIN_TILE:
        TB = _round_up(pl.cdiv(b_pad, 2), MIN_TILE)
    Bp = _round_up(B, TB)
    if Bp != B:
        x = jnp.pad(x, ((0, Bp - B), (0, 0)))
    grid = (Bp // TB,)

    weight_args = [
        params["w1"], params["b1"],
        params["w2"], params["b2"],
        params["w3"], params["b3"],
        params["w4"], params["b4"],
        params["w5"], params["b5"],
    ]

    def resident_spec(a):
        # Constant index_map: the block never changes -> copied into VMEM once, stays resident
        # across all batch tiles (no re-DMA per grid step).
        return pl.BlockSpec(a.shape, lambda i, n=a.ndim: (0,) * n)

    out = pl.pallas_call(
        dnn_kernel,
        grid=grid,
        in_specs=[pl.BlockSpec((TB, indim), lambda i: (i, 0))]
        + [resident_spec(a) for a in weight_args],
        out_specs=pl.BlockSpec((TB, CLASS_PAD), lambda i: (i, 0)),
        out_shape=jax.ShapeDtypeStruct((Bp, CLASS_PAD), jnp.bfloat16),
        compiler_params=pltpu.CompilerParams(
            dimension_semantics=("parallel",)),   # batch tiles shard across v7x's 2 TCs
    )(x, *weight_args)
    return out[:B, :NUM_CLASSES].astype(jnp.float32)


# ----------------------------------------------------------------------------- references


def dnn_reference_f32(x, raw):
    """Pure-JAX f32 reference matching PyTorch eval semantics (unfolded)."""
    h = x
    for layer in range(1, 5):
        h = h @ raw[f"w{layer}"] + raw[f"b{layer}"]
        scale = raw[f"gamma{layer}"] * jax.lax.rsqrt(raw[f"var{layer}"] + BN_EPS)
        h = h * scale + (raw[f"beta{layer}"] - raw[f"mean{layer}"] * scale)
        h = jnp.where(h >= 0, h, NEG_SLOPE * h)
    logits = h @ raw["w5"] + raw["b5"]
    return jax.nn.softmax(logits, axis=1)


def dnn_reference_folded(x, params):
    """Pure-JAX reference using the same folded bf16 params / bf16 activation path as the kernel."""
    h = x.astype(jnp.bfloat16)
    for layer in range(1, 5):
        h = jnp.dot(h, params[f"w{layer}"],
                    preferred_element_type=jnp.float32) + params[f"b{layer}"]
        h = h.astype(jnp.bfloat16)
        h = jnp.where(h >= 0, h, NEG_SLOPE * h)
    logits = jnp.dot(h, params["w5"],
                     preferred_element_type=jnp.float32) + params["b5"]
    return jax.nn.softmax(logits[:, :NUM_CLASSES], axis=1)


# ----------------------------------------------------------------------------- demo


if __name__ == "__main__":
    INDIM = 32
    BATCH = 32   # small correctness demo; default block_b auto-splits this into 2 tiles of 16

    key = jax.random.PRNGKey(0)
    kx, kp = jax.random.split(key)
    x = jax.random.normal(kx, (BATCH, INDIM), jnp.float32)

    raw = make_raw_params(kp, INDIM)
    params = fold_params(raw)

    fwd = jax.jit(functools.partial(dnn_forward))   # default block_b=1024
    out = jax.block_until_ready(fwd(x, params))

    assert out.shape == (BATCH, NUM_CLASSES)
    assert out.dtype == jnp.float32

    ref_folded = dnn_reference_folded(x, params)
    ref_f32 = dnn_reference_f32(x, raw)
    # Tolerances cover bf16 weights/activations/output + the approximate EUP reciprocal; real
    # semantic bugs (wrong slope, missing BN fold, wrong softmax) blow far past these.
    assert jnp.allclose(out, ref_folded, atol=1e-2, rtol=1e-2), "mismatch vs folded bf16 reference"
    assert jnp.allclose(out, ref_f32, atol=2e-2, rtol=2e-2), "mismatch vs f32 PyTorch-equivalent reference"
    assert jnp.allclose(jnp.sum(out, axis=1), 1.0, atol=1e-2), "softmax rows must sum to ~1"

    print("KERNEL_OK")
</pallas_src>

<mosaic_0001>
module attributes {stable_mosaic.version = 11 : i64} {
  func.func @dnn_kernel(%arg0: i32, %arg1: memref<16x32xf32, #tpu.memory_space<vmem>>, %arg2: memref<32x64xbf16, #tpu.memory_space<vmem>>, %arg3: memref<1x64xf32, #tpu.memory_space<vmem>>, %arg4: memref<64x128xbf16, #tpu.memory_space<vmem>>, %arg5: memref<1x128xf32, #tpu.memory_space<vmem>>, %arg6: memref<128x256xbf16, #tpu.memory_space<vmem>>, %arg7: memref<1x256xf32, #tpu.memory_space<vmem>>, %arg8: memref<256x512xbf16, #tpu.memory_space<vmem>>, %arg9: memref<1x512xf32, #tpu.memory_space<vmem>>, %arg10: memref<512x128xbf16, #tpu.memory_space<vmem>>, %arg11: memref<1x128xf32, #tpu.memory_space<vmem>>, %arg12: memref<16x128xbf16, #tpu.memory_space<vmem>>) attributes {dimension_semantics = [#tpu.dimension_semantics<parallel>], iteration_bounds = array<i64: 2>, scalar_prefetch = 0 : i64, scratch_operands = 0 : i64, tpu.core_type = #tpu.core_type<tc>, window_params = [{transform_indices = @transform_0, window_bounds = array<i64: 16, 32>}, {pipeline_mode = #tpu.pipeline_mode<synchronous>, transform_indices = @transform_1, window_bounds = array<i64: 32, 64>}, {pipeline_mode = #tpu.pipeline_mode<synchronous>, transform_indices = @transform_2, window_bounds = array<i64: 1, 64>}, {pipeline_mode = #tpu.pipeline_mode<synchronous>, transform_indices = @transform_3, window_bounds = array<i64: 64, 128>}, {pipeline_mode = #tpu.pipeline_mode<synchronous>, transform_indices = @transform_4, window_bounds = array<i64: 1, 128>}, {pipeline_mode = #tpu.pipeline_mode<synchronous>, transform_indices = @transform_5, window_bounds = array<i64: 128, 256>}, {pipeline_mode = #tpu.pipeline_mode<synchronous>, transform_indices = @transform_6, window_bounds = array<i64: 1, 256>}, {pipeline_mode = #tpu.pipeline_mode<synchronous>, transform_indices = @transform_7, window_bounds = array<i64: 256, 512>}, {pipeline_mode = #tpu.pipeline_mode<synchronous>, transform_indices = @transform_8, window_bounds = array<i64: 1, 512>}, {pipeline_mode = #tpu.pipeline_mode<synchronous>, transform_indices = @transform_9, window_bounds = array<i64: 512, 128>}, {pipeline_mode = #tpu.pipeline_mode<synchronous>, transform_indices = @transform_10, window_bounds = array<i64: 1, 128>}, {transform_indices = @transform_11, window_bounds = array<i64: 16, 128>}]} {
    %c0 = arith.constant 0 : index
    %c0_0 = arith.constant 0 : index
    %0 = vector.load %arg1[%c0, %c0_0] : memref<16x32xf32, #tpu.memory_space<vmem>>, vector<16x32xf32>
    %1 = arith.truncf %0 : vector<16x32xf32> to vector<16x32xbf16>
    %c0_1 = arith.constant 0 : index
    %c0_2 = arith.constant 0 : index
    %2 = vector.load %arg2[%c0_1, %c0_2] : memref<32x64xbf16, #tpu.memory_space<vmem>>, vector<32x64xbf16>
    %cst = arith.constant dense<0.000000e+00> : vector<16x64xf32>
    %3 = tpu.matmul %1, %2, %cst {dimension_numbers = #tpu.dot_dimension_numbers<[1], [0], [0], [1], [0, 0, 1, 1], [], []>} : vector<16x32xbf16>, vector<32x64xbf16>, vector<16x64xf32> -> vector<16x64xf32>
    %c0_3 = arith.constant 0 : index
    %c0_4 = arith.constant 0 : index
    %4 = vector.load %arg3[%c0_3, %c0_4] : memref<1x64xf32, #tpu.memory_space<vmem>>, vector<1x64xf32>
    %5 = vector.broadcast %4 : vector<1x64xf32> to vector<16x64xf32>
    %6 = arith.addf %3, %5 : vector<16x64xf32>
    %7 = arith.truncf %6 : vector<16x64xf32> to vector<16x64xbf16>
    %cst_5 = arith.constant 0.000000e+00 : bf16
    %8 = vector.broadcast %cst_5 : bf16 to vector<16x64xbf16>
    %9 = arith.cmpf oge, %7, %8 : vector<16x64xbf16>
    %cst_6 = arith.constant 1.000980e-02 : bf16
    %10 = vector.broadcast %cst_6 : bf16 to vector<16x64xbf16>
    %11 = arith.mulf %10, %7 : vector<16x64xbf16>
    %12 = arith.select %9, %7, %11 : vector<16x64xi1>, vector<16x64xbf16>
    %c0_7 = arith.constant 0 : index
    %c0_8 = arith.constant 0 : index
    %13 = vector.load %arg4[%c0_7, %c0_8] : memref<64x128xbf16, #tpu.memory_space<vmem>>, vector<64x128xbf16>
    %cst_9 = arith.constant dense<0.000000e+00> : vector<16x128xf32>
    %14 = tpu.matmul %12, %13, %cst_9 {dimension_numbers = #tpu.dot_dimension_numbers<[1], [0], [0], [1], [0, 0, 1, 1], [], []>} : vector<16x64xbf16>, vector<64x128xbf16>, vector<16x128xf32> -> vector<16x128xf32>
    %c0_10 = arith.constant 0 : index
    %c0_11 = arith.constant 0 : index
    %15 = vector.load %arg5[%c0_10, %c0_11] : memref<1x128xf32, #tpu.memory_space<vmem>>, vector<1x128xf32>
    %16 = vector.broadcast %15 : vector<1x128xf32> to vector<16x128xf32>
    %17 = arith.addf %14, %16 : vector<16x128xf32>
    %18 = arith.truncf %17 : vector<16x128xf32> to vector<16x128xbf16>
    %cst_12 = arith.constant 0.000000e+00 : bf16
    %19 = vector.broadcast %cst_12 : bf16 to vector<16x128xbf16>
    %20 = arith.cmpf oge, %18, %19 : vector<16x128xbf16>
    %cst_13 = arith.constant 1.000980e-02 : bf16
    %21 = vector.broadcast %cst_13 : bf16 to vector<16x128xbf16>
    %22 = arith.mulf %21, %18 : vector<16x128xbf16>
    %23 = arith.select %20, %18, %22 : vector<16x128xi1>, vector<16x128xbf16>
    %c0_14 = arith.constant 0 : index
    %c0_15 = arith.constant 0 : index
    %24 = vector.load %arg6[%c0_14, %c0_15] : memref<128x256xbf16, #tpu.memory_space<vmem>>, vector<128x256xbf16>
    %cst_16 = arith.constant dense<0.000000e+00> : vector<16x256xf32>
    %25 = tpu.matmul %23, %24, %cst_16 {dimension_numbers = #tpu.dot_dimension_numbers<[1], [0], [0], [1], [0, 0, 1, 1], [], []>} : vector<16x128xbf16>, vector<128x256xbf16>, vector<16x256xf32> -> vector<16x256xf32>
    %c0_17 = arith.constant 0 : index
    %c0_18 = arith.constant 0 : index
    %26 = vector.load %arg7[%c0_17, %c0_18] : memref<1x256xf32, #tpu.memory_space<vmem>>, vector<1x256xf32>
    %27 = vector.broadcast %26 : vector<1x256xf32> to vector<16x256xf32>
    %28 = arith.addf %25, %27 : vector<16x256xf32>
    %29 = arith.truncf %28 : vector<16x256xf32> to vector<16x256xbf16>
    %cst_19 = arith.constant 0.000000e+00 : bf16
    %30 = vector.broadcast %cst_19 : bf16 to vector<16x256xbf16>
    %31 = arith.cmpf oge, %29, %30 : vector<16x256xbf16>
    %cst_20 = arith.constant 1.000980e-02 : bf16
    %32 = vector.broadcast %cst_20 : bf16 to vector<16x256xbf16>
    %33 = arith.mulf %32, %29 : vector<16x256xbf16>
    %34 = arith.select %31, %29, %33 : vector<16x256xi1>, vector<16x256xbf16>
    %c0_21 = arith.constant 0 : index
    %c0_22 = arith.constant 0 : index
    %35 = vector.load %arg8[%c0_21, %c0_22] : memref<256x512xbf16, #tpu.memory_space<vmem>>, vector<256x512xbf16>
    %cst_23 = arith.constant dense<0.000000e+00> : vector<16x512xf32>
    %36 = tpu.matmul %34, %35, %cst_23 {dimension_numbers = #tpu.dot_dimension_numbers<[1], [0], [0], [1], [0, 0, 1, 1], [], []>} : vector<16x256xbf16>, vector<256x512xbf16>, vector<16x512xf32> -> vector<16x512xf32>
    %c0_24 = arith.constant 0 : index
    %c0_25 = arith.constant 0 : index
    %37 = vector.load %arg9[%c0_24, %c0_25] : memref<1x512xf32, #tpu.memory_space<vmem>>, vector<1x512xf32>
    %38 = vector.broadcast %37 : vector<1x512xf32> to vector<16x512xf32>
    %39 = arith.addf %36, %38 : vector<16x512xf32>
    %40 = arith.truncf %39 : vector<16x512xf32> to vector<16x512xbf16>
    %cst_26 = arith.constant 0.000000e+00 : bf16
    %41 = vector.broadcast %cst_26 : bf16 to vector<16x512xbf16>
    %42 = arith.cmpf oge, %40, %41 : vector<16x512xbf16>
    %cst_27 = arith.constant 1.000980e-02 : bf16
    %43 = vector.broadcast %cst_27 : bf16 to vector<16x512xbf16>
    %44 = arith.mulf %43, %40 : vector<16x512xbf16>
    %45 = arith.select %42, %40, %44 : vector<16x512xi1>, vector<16x512xbf16>
    %c0_28 = arith.constant 0 : index
    %c0_29 = arith.constant 0 : index
    %46 = vector.load %arg10[%c0_28, %c0_29] : memref<512x128xbf16, #tpu.memory_space<vmem>>, vector<512x128xbf16>
    %cst_30 = arith.constant dense<0.000000e+00> : vector<16x128xf32>
    %47 = tpu.matmul %45, %46, %cst_30 {dimension_numbers = #tpu.dot_dimension_numbers<[1], [0], [0], [1], [0, 0, 1, 1], [], []>} : vector<16x512xbf16>, vector<512x128xbf16>, vector<16x128xf32> -> vector<16x128xf32>
    %c0_31 = arith.constant 0 : index
    %c0_32 = arith.constant 0 : index
    %48 = vector.load %arg11[%c0_31, %c0_32] : memref<1x128xf32, #tpu.memory_space<vmem>>, vector<1x128xf32>
    %49 = vector.broadcast %48 : vector<1x128xf32> to vector<16x128xf32>
    %50 = arith.addf %47, %49 : vector<16x128xf32>
    %51 = tpu.iota {dimensions = array<i32: 1>} : vector<16x128xi32>
    %c2_i32 = arith.constant 2 : i32
    %52 = vector.broadcast %c2_i32 : i32 to vector<16x128xi32>
    %53 = arith.cmpi slt, %51, %52 : vector<16x128xi32>
    %cst_33 = arith.constant -1.000000e+30 : f32
    %54 = vector.broadcast %cst_33 : f32 to vector<16x128xf32>
    %55 = arith.select %53, %50, %54 : vector<16x128xi1>, vector<16x128xf32>
    %cst_34 = arith.constant dense<0xFF800000> : vector<16xf32>
    %56 = vector.multi_reduction <maximumf>, %55, %cst_34 [1] : vector<16x128xf32> to vector<16xf32>
    %57 = vector.shape_cast %56 : vector<16xf32> to vector<16x1xf32>
    %58 = vector.broadcast %57 : vector<16x1xf32> to vector<16x128xf32>
    %59 = arith.subf %55, %58 : vector<16x128xf32>
    %60 = math.exp %59 : vector<16x128xf32>
    %cst_35 = arith.constant 0.000000e+00 : f32
    %61 = vector.broadcast %cst_35 : f32 to vector<16x128xf32>
    %62 = arith.select %53, %60, %61 : vector<16x128xi1>, vector<16x128xf32>
    %cst_36 = arith.constant dense<0.000000e+00> : vector<16xf32>
    %63 = vector.multi_reduction <add>, %62, %cst_36 [1] : vector<16x128xf32> to vector<16xf32>
    %64 = vector.shape_cast %63 : vector<16xf32> to vector<16x1xf32>
    %65 = tpu.reciprocal %64 {approx = true} : vector<16x1xf32> -> vector<16x1xf32>
    %66 = vector.broadcast %65 : vector<16x1xf32> to vector<16x128xf32>
    %67 = arith.mulf %62, %66 : vector<16x128xf32>
    %68 = arith.truncf %67 : vector<16x128xf32> to vector<16x128xbf16>
    %c0_37 = arith.constant 0 : index
    %c0_38 = arith.constant 0 : index
    %69 = vector.load %arg12[%c0_37, %c0_38] : memref<16x128xbf16, #tpu.memory_space<vmem>>, vector<16x128xbf16>
    tpu.vector_store %arg12[%c0_37, %c0_38], %68 {strides = array<i32>} : memref<16x128xbf16, #tpu.memory_space<vmem>>, vector<16x128xbf16>,
    return
  }
  func.func @transform_0(%arg0: i32) -> (i32, i32) {
    %c0_i32 = arith.constant 0 : i32
    %c0_i32_0 = arith.constant 0 : i32
    return %arg0, %c0_i32 : i32, i32
  }
  func.func @transform_1(%arg0: i32) -> (i32, i32) {
    %c0_i32 = arith.constant 0 : i32
    %c0_i32_0 = arith.constant 0 : i32
    %c0_i32_1 = arith.constant 0 : i32
    return %c0_i32, %c0_i32_0 : i32, i32
  }
  func.func @transform_2(%arg0: i32) -> (i32, i32) {
    %c0_i32 = arith.constant 0 : i32
    %c0_i32_0 = arith.constant 0 : i32
    %c0_i32_1 = arith.constant 0 : i32
    return %c0_i32, %c0_i32_0 : i32, i32
  }
  func.func @transform_3(%arg0: i32) -> (i32, i32) {
    %c0_i32 = arith.constant 0 : i32
    %c0_i32_0 = arith.constant 0 : i32
    %c0_i32_1 = arith.constant 0 : i32
    return %c0_i32, %c0_i32_0 : i32, i32
  }
  func.func @transform_4(%arg0: i32) -> (i32, i32) {
    %c0_i32 = arith.constant 0 : i32
    %c0_i32_0 = arith.constant 0 : i32
    %c0_i32_1 = arith.constant 0 : i32
    return %c0_i32, %c0_i32_0 : i32, i32
  }
  func.func @transform_5(%arg0: i32) -> (i32, i32) {
    %c0_i32 = arith.constant 0 : i32
    %c0_i32_0 = arith.constant 0 : i32
    %c0_i32_1 = arith.constant 0 : i32
    return %c0_i32, %c0_i32_0 : i32, i32
  }
  func.func @transform_6(%arg0: i32) -> (i32, i32) {
    %c0_i32 = arith.constant 0 : i32
    %c0_i32_0 = arith.constant 0 : i32
    %c0_i32_1 = arith.constant 0 : i32
    return %c0_i32, %c0_i32_0 : i32, i32
  }
  func.func @transform_7(%arg0: i32) -> (i32, i32) {
    %c0_i32 = arith.constant 0 : i32
    %c0_i32_0 = arith.constant 0 : i32
    %c0_i32_1 = arith.constant 0 : i32
    return %c0_i32, %c0_i32_0 : i32, i32
  }
  func.func @transform_8(%arg0: i32) -> (i32, i32) {
    %c0_i32 = arith.constant 0 : i32
    %c0_i32_0 = arith.constant 0 : i32
    %c0_i32_1 = arith.constant 0 : i32
    return %c0_i32, %c0_i32_0 : i32, i32
  }
  func.func @transform_9(%arg0: i32) -> (i32, i32) {
    %c0_i32 = arith.constant 0 : i32
    %c0_i32_0 = arith.constant 0 : i32
    %c0_i32_1 = arith.constant 0 : i32
    return %c0_i32, %c0_i32_0 : i32, i32
  }
  func.func @transform_10(%arg0: i32) -> (i32, i32) {
    %c0_i32 = arith.constant 0 : i32
    %c0_i32_0 = arith.constant 0 : i32
    %c0_i32_1 = arith.constant 0 : i32
    return %c0_i32, %c0_i32_0 : i32, i32
  }
  func.func @transform_11(%arg0: i32) -> (i32, i32) {
    %c0_i32 = arith.constant 0 : i32
    %c0_i32_0 = arith.constant 0 : i32
    return %arg0, %c0_i32 : i32, i32
  }
}

</mosaic_0001>

<bundles_post_ra>
// kernel: dnn_forward.1
= control target key start
LH: loop header
LB: loop body
LE: loop exit
PB: predicated region body
PF: predicated region fallthrough
CT: control target
= control target key end

     0   :  { %s3060_s0 = inlined_call_operand.hbm [shape: f32[32,32], index: 0, kind: input, shape index: {}]   ;;  %s3061_s1 = inlined_call_operand.vmem [shape: bf16[32,64], index: 1, kind: input, shape index: {}]   ;;  %s3062_s2 = inlined_call_operand.hbm [shape: f32[1,64], index: 2, kind: input, shape index: {}]   ;;  %s3063_s3 = inlined_call_operand.hbm [shape: bf16[64,128], index: 3, kind: input, shape index: {}]   ;;  %s3064_s4 = inlined_call_operand.hbm [shape: f32[1,128], index: 4, kind: input, shape index: {}]   ;;  %s3065_s5 = inlined_call_operand.hbm [shape: bf16[128,256], index: 5, kind: input, shape index: {}]   ;;  %s3066_s6 = inlined_call_operand.vmem [shape: f32[1,256], index: 6, kind: input, shape index: {}]   ;;  %s3067_s7 = inlined_call_operand.hbm [shape: bf16[256,512], index: 7, kind: input, shape index: {}]   ;;  %s3068_s8 = inlined_call_operand.vmem [shape: f32[1,512], index: 8, kind: input, shape index: {}]   ;;  %s3069_s9 = inlined_call_operand.hbm [shape: bf16[512,128], index: 9, kind: input, shape index: {}]   ;;  %s3070_s10 = inlined_call_operand.hbm [shape: f32[1,128], index: 10, kind: input, shape index: {}]   ;;  %s3071_s11 = inlined_call_operand.vmem [shape: bf16[32,128], index: 11, kind: output, shape index: {}]  }
   0x1   :  { %3078 = sst [smem:[#allocation20_spill]] %s3062_s2 }
   0x2   :  { %3079 = sst [smem:[#allocation21_spill]] %s3063_s3 }
   0x3   :  { %3080 = sst [smem:[#allocation22_spill]] %s3064_s4 }
   0x4   :  { %3081 = sst [smem:[#allocation23_spill]] %s3067_s7 }
   0x5   :  { %3082 = sst [smem:[#allocation24_spill]] %s3071_s11 }
   0x6   :  { %16 = vsyncpa [#allocation3], 0 }
   0x7   :  { %18 = vsyncpa [#allocation3 + $0x1], 0 }
   0x8   :  { %19 = vsyncpa [#allocation5], 0 }
   0x9   :  { %20 = vsyncpa [#allocation8], 0 }
   0xa   :  { %21 = vsyncpa [#allocation11], 0 }
   0xb   :  { %22 = vsyncpa [#allocation14], 0  ;;  %s2723_s17 = smov 0   ;;  %s2725_s18 = smov 0  }
   0xc   :  { %s2727_s19 = smov 0   ;;  %s2729_s20 = smov 0  }
   0xd LB: > { %s2646_s21 = smov [#allocation4]   ;;  %s3075_s23 = sadd.s32 4294967295, %s2644_s20   ;;  %s2644_s20 = sphi %s2729_s20, %s3103_s20   ;;  %s2640_s19 = sphi %s2727_s19, %s3102_s19   ;;  %s2636_s18 = sphi %s2725_s18, %s3101_s18   ;;  %s2632_s17 = sphi %s2723_s17, %s3100_s17  }
   0xe   : > { %s311_s22 = sshll.u32 %s2646_s21, 4  ;;  %p1853_p0 = scmp.ge.s32.totalorder %s2644_s20, 1  ;;  %s312_s22 = int_to_ptr.vmem [resolvable:$true] %s311_s22 }
   0xf   : > { %p2747_p1 = scmp.eq.s32.totalorder %s3075_s23, 0  ;;  %p295_p2 = scmp.lt.s32.totalorder %s2644_s20, 3 }
  0x10   : > { %s2647_s26 = smov [#allocation7]   ;;  %s2648_s28 = smov [#allocation10]  }
  0x11   : > { %s3083_s24 = scalar_select %p2747_p1, 1, 0 }
  0x12   : > { %p2752_p3 = pnand %p1853_p0, %p295_p2  ;;  %s335_s27 = sshll.u32 %s2647_s26, 4  ;;  %s2758_s27 = int_to_ptr.vmem [resolvable:$true] %s335_s27 }
  0x13   : > { %s361_s29 = sshll.u32 %s2648_s28, 4  ;;  %s3086_s2 = sld [smem:[#allocation20_spill]]  ;;  %s2766_s29 = int_to_ptr.vmem [resolvable:$true] %s361_s29 }
  0x14   : > { %s3084_s25 = scalar_select %p2752_p3, 1, 0 }
  0x15   : > { %p2113_p4 = pneg %p2752_p3 }
  0x17   : > { %p2762_p5 = pnand %p2113_p4, %p2747_p1 }
  0x19   : > { %s2368_s14 = scalar_lea.hbm %s3086_s2, 16  ;;  %p2776_p7 = pneg %p2762_p5 }
  0x1a   : > { %p2369_p6 = scmp.ne.s32.totalorder %s3086_s2, %s2368_s14  ;;  %p2375_p10 = scmp.lt.u32.totalorder %s2368_s14, %s3086_s2 }
  0x1c   : > { %p2371_p8 = pnand %p2776_p7, %p2369_p6 }
  0x1e   : > { %p2372_p9 = pneg %p2371_p8 }
  0x20   : > { %p2377_p11 = pnand %p2375_p10, %p2372_p9 }
  0x22   : > { %2380 = shalt.err (!%p2377_p11)
}
  0x23   : > { %s2381_s12 = scalar_lea.vmem %s312_s22, 16  ;;  %s2388_s13 = scalar_lea.vmem %s312_s22, 32 }
  0x24   : > { %p2382_p12 = scmp.ne.s32.totalorder %s312_s22, %s2381_s12  ;;  %p2389_p2 = scmp.lt.s32.totalorder %s312_s22, %s312_s22 }
  0x25   : > { %p2390_p4 = scmp.lt.s32.totalorder %s2388_s13, %s2381_s12 }
  0x26   : > { %p2384_p13 = pnand %p2382_p12, %p2776_p7 }
  0x27   : > { %p2391_p3 = por %p2390_p4, %p2389_p2 }
  0x28   : > { %p2385_p0 = pneg %p2384_p13 }
  0x2a   : > { %p2392_p1 = pnand %p2391_p3, %p2385_p0 }
  0x2c   : > { %2395 = shalt.err (!%p2392_p1)
}
  0x2d   : > { %2116 = dma.hbm_to_vmem [thread:$0]  (!%p2762_p5), %s3086_s2, 16, %s312_s22, [#allocation5]  }
  0x2e   : > { %s3088_s4 = sld [smem:[#allocation22_spill]] }
  0x34   : > { %s2396_s28 = scalar_lea.hbm %s3088_s4, 16 }
  0x35   : > { %p2397_p6 = scmp.ne.s32.totalorder %s3088_s4, %s2396_s28  ;;  %p2403_p1 = scmp.lt.u32.totalorder %s2396_s28, %s3088_s4 }
  0x37   : > { %p2399_p8 = pnand %p2397_p6, %p2776_p7 }
  0x39   : > { %p2400_p9 = pneg %p2399_p8 }
  0x3b   : > { %p2405_p3 = pnand %p2403_p1, %p2400_p9 }
  0x3d   : > { %2408 = shalt.err (!%p2405_p3)
}
  0x3e   : > { %s2409_s22 = scalar_lea.vmem %s2758_s27, 16  ;;  %s2416_s11 = scalar_lea.vmem %s2758_s27, 32 }
  0x3f   : > { %p2410_p10 = scmp.ne.s32.totalorder %s2758_s27, %s2409_s22  ;;  %p2417_p13 = scmp.lt.s32.totalorder %s2758_s27, %s2758_s27 }
  0x40   : > { %p2418_p0 = scmp.lt.s32.totalorder %s2416_s11, %s2409_s22 }
  0x41   : > { %p2412_p11 = pnand %p2410_p10, %p2776_p7 }
  0x42   : > { %p2419_p2 = por %p2418_p0, %p2417_p13 }
  0x43   : > { %p2413_p12 = pneg %p2412_p11 }
  0x45   : > { %p2420_p4 = pnand %p2419_p2, %p2413_p12 }
  0x47   : > { %2423 = shalt.err (!%p2420_p4)
}
  0x48   : > { %2122 = dma.hbm_to_vmem [thread:$0]  (!%p2762_p5), %s3088_s4, 16, %s2758_s27, [#allocation8]  }
  0x49   : > { %s3089_s7 = sld [smem:[#allocation23_spill]] }
  0x4f   : > { %s2424_s26 = scalar_lea.hbm %s3089_s7, 8192 }
  0x50   : > { %p2425_p6 = scmp.ne.s32.totalorder %s3089_s7, %s2424_s26  ;;  %p2431_p1 = scmp.lt.u32.totalorder %s2424_s26, %s3089_s7 }
  0x52   : > { %p2427_p8 = pnand %p2425_p6, %p2776_p7 }
  0x54   : > { %p2428_p9 = pneg %p2427_p8 }
  0x56   : > { %p2433_p3 = pnand %p2431_p1, %p2428_p9 }
  0x58   : > { %2436 = shalt.err (!%p2433_p3)
}
  0x59   : > { %s2437_s27 = scalar_lea.vmem %s2766_s29, 8192  ;;  %p2445_p13 = scmp.lt.s32.totalorder %s2766_s29, %s2766_s29 }
  0x5a   : > { %p2438_p10 = scmp.ne.s32.totalorder %s2766_s29, %s2437_s27  ;;  %p2446_p0 = scmp.lt.s32.totalorder %s2437_s27, %s2437_s27 }
  0x5c   : > { %p2440_p11 = pnand %p2438_p10, %p2776_p7  ;;  %p2447_p2 = por %p2446_p0, %p2445_p13 }
  0x5e   : > { %p2441_p12 = pneg %p2440_p11 }
  0x60   : > { %p2448_p4 = pnand %p2447_p2, %p2441_p12 }
  0x62   : > { %2451 = shalt.err (!%p2448_p4)
}
  0x63   : > { %s2649_s11 = smov 256   ;;  %s2650_s23 = smov 16  }
  0x64   : > { %2128 = dma.hbm_to_vmem [thread:$0]  (!%p2762_p5), %s3089_s7, 8192, %s2766_s29, [#allocation11], %s2649_s11, %s2649_s11, %s2650_s23  }
  0x65   : > { %s2651_s14 = smov [#allocation6]   ;;  %s3090_s3 = sld [smem:[#allocation21_spill]] }
  0x66   : > { %s321_s26 = sshll.u32 %s2651_s14, 4  ;;  %s322_s26 = int_to_ptr.vmem [resolvable:$true] %s321_s26 }
  0x6b   : > { %s2452_s13 = scalar_lea.hbm %s3090_s3, 512 }
  0x6c   : > { %p2453_p6 = scmp.ne.s32.totalorder %s3090_s3, %s2452_s13  ;;  %p2459_p1 = scmp.lt.u32.totalorder %s2452_s13, %s3090_s3 }
  0x6e   : > { %p2455_p8 = pnand %p2453_p6, %p2776_p7 }
  0x70   : > { %p2456_p9 = pneg %p2455_p8 }
  0x72   : > { %p2461_p3 = pnand %p2459_p1, %p2456_p9 }
  0x74   : > { %2464 = shalt.err (!%p2461_p3)
}
  0x75   : > { %s2465_s29 = scalar_lea.vmem %s322_s26, 512  ;;  %p2473_p13 = scmp.lt.s32.totalorder %s322_s26, %s322_s26 }
  0x76   : > { %p2466_p10 = scmp.ne.s32.totalorder %s322_s26, %s2465_s29  ;;  %p2474_p0 = scmp.lt.s32.totalorder %s2465_s29, %s2465_s29 }
  0x78   : > { %p2468_p11 = pnand %p2466_p10, %p2776_p7  ;;  %p2475_p2 = por %p2474_p0, %p2473_p13 }
  0x7a   : > { %p2469_p12 = pneg %p2468_p11 }
  0x7c   : > { %p2476_p4 = pnand %p2475_p2, %p2469_p12 }
  0x7e   : > { %2479 = shalt.err (!%p2476_p4)
}
  0x7f   : > { %s3076_s11 = smov 64   ;;  %s3077_s23 = smov 4  }
  0x80   : > { %2119 = dma.hbm_to_vmem [thread:$0]  (!%p2762_p5), %s3090_s3, 512, %s322_s26, [#allocation5], %s3076_s11, %s3076_s11, %s3077_s23  }
  0x81   : > { %s2654_s15 = smov [#allocation9]   ;;  %s2480_s12 = scalar_lea.hbm %s3065_s5, 2048 }
  0x82   : > { %s345_s16 = sshll.u32 %s2654_s15, 4  ;;  %p2481_p6 = scmp.ne.s32.totalorder %s3065_s5, %s2480_s12  ;;  %s346_s16 = int_to_ptr.vmem [resolvable:$true] %s345_s16 }
  0x83   : > { %p2487_p1 = scmp.lt.u32.totalorder %s2480_s12, %s3065_s5 }
  0x84   : > { %p2483_p8 = pnand %p2481_p6, %p2776_p7 }
  0x86   : > { %p2484_p9 = pneg %p2483_p8 }
  0x88   : > { %p2489_p3 = pnand %p2487_p1, %p2484_p9 }
  0x8a   : > { %2492 = shalt.err (!%p2489_p3)
}
  0x8b   : > { %s2493_s26 = scalar_lea.vmem %s346_s16, 2048  ;;  %p2501_p13 = scmp.lt.s32.totalorder %s346_s16, %s346_s16 }
  0x8c   : > { %p2494_p10 = scmp.ne.s32.totalorder %s346_s16, %s2493_s26  ;;  %p2502_p0 = scmp.lt.s32.totalorder %s2493_s26, %s2493_s26 }
  0x8e   : > { %p2496_p11 = pnand %p2494_p10, %p2776_p7  ;;  %p2503_p2 = por %p2502_p0, %p2501_p13 }
  0x90   : > { %p2497_p12 = pneg %p2496_p11 }
  0x92   : > { %p2504_p4 = pnand %p2503_p2, %p2497_p12 }
  0x94   : > { %2507 = shalt.err (!%p2504_p4)
}
  0x95   : > { %s2655_s2 = smov 128   ;;  %s2656_s4 = smov 8  }
  0x96   : > { %2125 = dma.hbm_to_vmem [thread:$0]  (!%p2762_p5), %s3065_s5, 2048, %s346_s16, [#allocation8], %s2655_s2, %s2655_s2, %s2656_s4  }
  0x97   : > { %s2657_s28 = smov [#allocation12]   ;;  %s2658_s13 = smov [#allocation13]  }
  0x98   : > { %s377_s12 = sshll.u32 %s2657_s28, 4  ;;  %s391_s22 = sshll.u32 %s2658_s13, 4  ;;  %s378_s12 = int_to_ptr.vmem [resolvable:$true] %s377_s12  ;;  %s392_s22 = int_to_ptr.vmem [resolvable:$true] %s391_s22 }
  0x99   : > { %s2508_s26 = scalar_lea.hbm %s3069_s9, 4096 }
  0x9a   : > { %p2509_p6 = scmp.ne.s32.totalorder %s3069_s9, %s2508_s26  ;;  %p2515_p1 = scmp.lt.u32.totalorder %s2508_s26, %s3069_s9 }
  0x9c   : > { %p2511_p8 = pnand %p2509_p6, %p2776_p7 }
  0x9e   : > { %p2512_p9 = pneg %p2511_p8 }
  0xa0   : > { %p2517_p3 = pnand %p2515_p1, %p2512_p9 }
  0xa2   : > { %2520 = shalt.err (!%p2517_p3)
}
  0xa3   : > { %s2521_s16 = scalar_lea.vmem %s378_s12, 4096  ;;  %p2529_p13 = scmp.lt.s32.totalorder %s378_s12, %s378_s12 }
  0xa4   : > { %p2522_p10 = scmp.ne.s32.totalorder %s378_s12, %s2521_s16  ;;  %p2530_p0 = scmp.lt.s32.totalorder %s2521_s16, %s2521_s16 }
  0xa6   : > { %p2524_p11 = pnand %p2522_p10, %p2776_p7  ;;  %p2531_p2 = por %p2530_p0, %p2529_p13 }
  0xa8   : > { %p2525_p12 = pneg %p2524_p11 }
  0xaa   : > { %p2532_p4 = pnand %p2531_p2, %p2525_p12 }
  0xac   : > { %2535 = shalt.err (!%p2532_p4)
}
  0xad   : > { %s3091_s11 = smov 4   ;;  %s3092_s23 = smov 64  }
  0xae   : > { %2131 = dma.hbm_to_vmem [thread:$0]  (!%p2762_p5), %s3069_s9, 4096, %s378_s12, [#allocation11], %s3092_s23, %s3092_s23, %s3091_s11  }
  0xaf   : > { %s2536_s28 = scalar_lea.hbm %s3070_s10, 16 }
  0xb0   : > { %p2537_p6 = scmp.ne.s32.totalorder %s3070_s10, %s2536_s28  ;;  %p2543_p1 = scmp.lt.u32.totalorder %s2536_s28, %s3070_s10 }
  0xb2   : > { %p2539_p8 = pnand %p2537_p6, %p2776_p7 }
  0xb4   : > { %p2540_p9 = pneg %p2539_p8 }
  0xb6   : > { %p2545_p3 = pnand %p2543_p1, %p2540_p9 }
  0xb8   : > { %2548 = shalt.err (!%p2545_p3)
}
  0xb9   : > { %s2549_s16 = scalar_lea.vmem %s392_s22, 16  ;;  %s2556_s12 = scalar_lea.vmem %s392_s22, 32 }
  0xba   : > { %p2550_p10 = scmp.ne.s32.totalorder %s392_s22, %s2549_s16  ;;  %p2557_p13 = scmp.lt.s32.totalorder %s392_s22, %s392_s22 }
  0xbb   : > { %p2558_p0 = scmp.lt.s32.totalorder %s2556_s12, %s2549_s16 }
  0xbc   : > { %p2552_p11 = pnand %p2550_p10, %p2776_p7 }
  0xbd   : > { %p2559_p2 = por %p2558_p0, %p2557_p13 }
  0xbe   : > { %p2553_p12 = pneg %p2552_p11 }
  0xc0   : > { %p2560_p4 = pnand %p2559_p2, %p2553_p12 }
  0xc2   : > { %2563 = shalt.err (!%p2560_p4)
}
  0xc3   : > { %2134 = dma.hbm_to_vmem [thread:$0]  (!%p2762_p5), %s3070_s10, 16, %s392_s22, [#allocation14]  }
  0xc4   : > { %s2921_s21 = sadd.s32 1, %s2644_s20   ;;  %s35_s3 = sadd.s32 1, %s2640_s19 }
  0xc5   : > { %s32_s30 = ssub.s32 %s2644_s20, %s2921_s21  ;;  %p42_p6 = scmp.ne.s32.totalorder %s2640_s19, %s2636_s18 }
  0xc6   : > { %p33_p7 = scmp.eq.s32.totalorder %s32_s30, 0  ;;  %p43_p8 = scmp.eq.s32.totalorder %s2644_s20, 0 }
  0xc7   : > { %p48_p9 = scmp.ne.s32.totalorder %s2636_s18, %s2632_s17  ;;  %p3093_p3 = scmp.ne.s32.totalorder %s3083_s24, 0 }
  0xc8   : > { %s2932_s7 = scalar_select %p33_p7, %s2640_s19, %s35_s3  }
  0xc9   : > { %p44_p1 = por %p43_p8, %p42_p6  ;;  %p2936_p10 = por %p3093_p3, %p48_p9 }
  0xca   : > { %p2146_p11 = scmp.lt.s32.totalorder %s2644_s20, 2  ;;  %s402_s14 = sand.u32 1, %s2640_s19  }
  0xcb   : > { %s1862_s22 = sshll.u32 %s402_s14, 4  ;;  %s2003_s28 = sshll.u32 %s2644_s20, 8 }
  0xcc   : > { %s2946_s29 = scalar_lea.hbm %s3060_s0, %s2003_s28  ;;  %s406_s17 = scalar_lea.vmem [#allocation2], %s1862_s22 }
  0xcd   : > { %s413_s26 = sshll.u32 %s406_s17, 4  ;;  %p2950_p5 = pnand %p2146_p11, %p44_p1  ;;  %s2948_s26 = int_to_ptr.vmem [resolvable:$true] %s413_s26 }
  0xce   : > { %s2954_s12 = scalar_lea.sflag [#allocation3], %s402_s14  ;;  %s2564_s11 = scalar_lea.hbm %s2946_s29, 256 }
  0xcf   : > { %p2565_p12 = scmp.ne.s32.totalorder %s2946_s29, %s2564_s11  ;;  %p2566_p13 = pneg %p2950_p5 }
  0xd0   : > { %s2569_s3 = scalar_lea.hbm %s3060_s0, 512  ;;  %p2570_p4 = scmp.lt.u32.totalorder %s2946_s29, %s3060_s0 }
  0xd1   : > { %p2567_p0 = pnand %p2566_p13, %p2565_p12  ;;  %p2571_p7 = scmp.lt.u32.totalorder %s2569_s3, %s2564_s11 }
  0xd2   : > { %p2573_p8 = scmp.lt.u32.totalorder %s2564_s11, %s2946_s29 }
  0xd3   : > { %p2568_p2 = pneg %p2567_p0  ;;  %p2572_p6 = por %p2571_p7, %p2570_p4 }
  0xd5   : > { %p2574_p9 = por %p2573_p8, %p2572_p6 }
  0xd7   : > { %p2575_p1 = pnand %p2574_p9, %p2568_p2 }
  0xd9   : > { %2578 = shalt.err (!%p2575_p1)
}
  0xda   : > { %s2579_s14 = scalar_lea.vmem %s2948_s26, 256  ;;  %s2659_s13 = smov [#allocation2]  }
  0xdb   : > { %p2580_p3 = scmp.ne.s32.totalorder %s2948_s26, %s2579_s14  ;;  %s2584_s27 = sshll.u32 %s2659_s13, 4  ;;  %s2585_s27 = int_to_ptr.vmem [resolvable:$false] %s2584_s27 }
  0xdc   : > { %s2586_s17 = scalar_lea.vmem %s2585_s27, 512  ;;  %p2587_p0 = scmp.lt.s32.totalorder %s2948_s26, %s2585_s27 }
  0xdd   : > { %p2582_p11 = pnand %p2580_p3, %p2566_p13  ;;  %p2588_p4 = scmp.lt.s32.totalorder %s2586_s17, %s2579_s14 }
  0xdf   : > { %p2583_p12 = pneg %p2582_p11  ;;  %p2589_p7 = por %p2588_p4, %p2587_p0 }
  0xe1   : > { %p2590_p6 = pnand %p2589_p7, %p2583_p12 }
  0xe3   : > { %2593 = shalt.err (!%p2590_p6)
}
  0xe4   : > { %2138 = dma.hbm_to_vmem [thread:$0]  (!%p2950_p5), %s2946_s29, 256, %s2948_s26, %s2954_s12, %s2655_s2, %s2655_s2, %s2656_s4  }
  0xe5   : > { %p3096_p13 = scmp.ne.s32.totalorder %s3084_s25, 0 }
  0xe6   : > { %s427_s11 = sand.u32 (!%p3096_p13), 1, %s2636_s18  }
  0xe7   : > { %425 = sbr.rel (%p3096_p13) target bundleno = 1685 (0x695), region = 64  ;;  %s1866_s23 = sshll.u32 (!%p3096_p13), %s427_s11, 4 }
  0xe8   : > { %s428_s30 = scalar_lea.sflag (!%p3096_p13), [#allocation3], %s427_s11  ;;  %s431_s3 = scalar_lea.vmem (!%p3096_p13), [#allocation2], %s1866_s23 }
  0xee   : > { %2611 = dma.done.wait (%p2936_p10), %s428_s30, 256  }
  0xef   : > { %2613 = vsyncadd (%p2936_p10), %s428_s30, 4294967040  ;;  %p3097_p2 = scmp.ne.s32.totalorder %s3083_s24, 0 }
  0xf1   : > { %2615 = dma.done.wait (%p3097_p2), [#allocation5], 528  }
  0xf2   : > { %2617 = vsyncadd (%p3097_p2), [#allocation5], 4294966768 }
  0xf3   : > { %2619 = dma.done.wait (%p3097_p2), [#allocation8], 2064  }
  0xf4   : > { %2621 = vsyncadd (%p3097_p2), [#allocation8], 4294965232 }
  0xf5   : > { %2623 = dma.done.wait (%p3097_p2), [#allocation11], 12288  }
  0xf6   : > { %2625 = vsyncadd (%p3097_p2), [#allocation11], 4294955008 }
  0xf7   : > { %2627 = dma.done.wait (%p3097_p2), [#allocation14], 16  }
  0xf8   : > { %2629 = vsyncadd (%p3097_p2), [#allocation14], 4294967280  ;;  %v2660_v0 = vmov 0.0   ;;  %vm2661_vm0 = vmmov 0   ;;  %v2202_v1 = vld [vmem:[%s3061_s1] sm:$0xff]   ;;  %v2203_v2 = vld [vmem:[%s3061_s1 + $0x8] sm:$0xff]  }
  0xf9   : > { %2063 = vmatprep.subr.bf16.mxu1 %v2660_v0  ;;  %2067 = vmatprep.mubr.msk.bf16.mxu1 %vm2661_vm0, %v2660_v0  ;;  %v507_v3 = vld [vmem:[%s431_s3] sm:$0xff]  ;;  %v508_v4 = vld [vmem:[%s431_s3 + $0x8] sm:$0xff]  ;;  %vm533_vm1 = vcmask 261120   ;;  %vm621_vm3 = vcmask 523264   ;;  %v2662_v36 = vmov 0   ;;  %s3098_s12 = sadd.s32 4294967295, %s2644_s20  }
  0xfa   : > { %2064 = vmatpush3.bf16.msra.mxu1 %v2202_v1  ;;  %v2204_v5 = vld [vmem:[#allocation6] sm:$0xff]   ;;  %v509_v6 = vpack.c.bf16 %v508_v4, %v507_v3  ;;  %v2205_v7 = vld [vmem:[#allocation6 + $0x8] sm:$0xff]   ;;  %v2206_v8 = vld [vmem:[#allocation6 + $0x10] sm:$0xff]   ;;  %810 = vmatprep.mubr.bf16.mxu0 %v2662_v36  ;;  %s1874_s22 = sshll.u32 %s3098_s12, 1  ;;  %s3099_s27 = sld [smem:[#allocation24_spill]] }
  0xfb   : > { %2065 = vmatprep.subr.bf16.mxu1 %v2660_v0  ;;  %v2207_v9 = vld [vmem:[#allocation6 + $0x18] sm:$0xff]   ;;  %v2208_v10 = vld [vmem:[#allocation9 + $0x4] ss:$8 sps:$4 sm:$0xff]   ;;  %v2210_v11 = vld [vmem:[#allocation9] ss:$8 sps:$4 sm:$0xff]   ;;  %p500_p10 = scmp.lt.s32.totalorder %s1874_s22, 3 }
  0xfc   : > { %v2211_v12 = vld [vmem:[#allocation9 + $0x14] ss:$8 sps:$4 sm:$0xff]   ;;  %778 = vmatprep.subr.bf16.mxu0 %v2208_v10  ;;  %v2213_v13 = vld [vmem:[#allocation9 + $0x10] ss:$8 sps:$4 sm:$0xff]   ;;  %v2214_v14 = vld [vmem:[#allocation9 + $0x24] ss:$8 sps:$4 sm:$0xff]  }
  0xfd   : > { %779 = vmatpush1.bf16.msra.mxu0 %v2210_v11  ;;  %v2216_v15 = vld [vmem:[#allocation9 + $0x20] ss:$8 sps:$4 sm:$0xff]   ;;  %v2217_v16 = vld [vmem:[#allocation9 + $0x34] ss:$8 sps:$4 sm:$0xff]   ;;  %v2219_v17 = vld [vmem:[#allocation9 + $0x30] ss:$8 sps:$4 sm:$0xff]  }
  0xfe   : > { %2066 = vmatpush3.bf16.msra.mxu1 %v2203_v2  ;;  %780 = vmatprep.subr.bf16.mxu0 %v2211_v12  ;;  %v2220_v18 = vld [vmem:[#allocation9 + $0x44] ss:$8 sps:$4 sm:$0xff]   ;;  %v2222_v19 = vld [vmem:[#allocation9 + $0x40] ss:$8 sps:$4 sm:$0xff]   ;;  %v2223_v20 = vld [vmem:[#allocation9 + $0x54] ss:$8 sps:$4 sm:$0xff]  }
  0xff   : > { %2071 = vmatprep.subr.bf16.mxu1 %v2660_v0  ;;  %v2225_v21 = vld [vmem:[#allocation9 + $0x50] ss:$8 sps:$4 sm:$0xff]   ;;  %v1876_v22 = vld [vmem:[#allocation4] ss:$0 sm:$0xff]  ;;  %v2226_v32 = vld [vmem:[#allocation9 + $0x64] ss:$8 sps:$4 sm:$0xff]  }
 0x100   : > { %v2228_v33 = vld [vmem:[#allocation9 + $0x60] ss:$8 sps:$4 sm:$0xff]   ;;  %v2229_v34 = vld [vmem:[#allocation9 + $0x74] ss:$8 sps:$4 sm:$0xff]   ;;  %v2231_v35 = vld [vmem:[#allocation9 + $0x70] ss:$8 sps:$4 sm:$0xff]  }
 0x101   : > { %2068 = vmatmul.mubr.msk.bf16.vlgmr.msra.gmra.mrb[0].mxu1 %vm533_vm1, %v509_v6  ;;  %781 = vmatpush1.bf16.msra.mxu0 %v2213_v13  ;;  %v2232_v37 = vld [vmem:[#allocation10] ss:$16 sps:$4 sm:$0xff]   ;;  %v2234_v38 = vld [vmem:[#allocation10 + $0x4] ss:$16 sps:$4 sm:$0xff]   ;;  %v2237_v39 = vld [vmem:[#allocation10 + $0xc] ss:$16 sps:$4 sm:$0xff]  }
 0x102   : > { %2072 = vmatpush3.bf16.msra.mxu1 %v2204_v5  ;;  %2079 = vmatprep.mubr.msk.bf16.mxu1 %vm2661_vm0, %v2660_v0  ;;  %v2240_v40 = vld [vmem:[#allocation10 + $0x24] ss:$16 sps:$4 sm:$0xff]   ;;  %v2238_v41 = vld [vmem:[#allocation10 + $0x20] ss:$16 sps:$4 sm:$0xff]   ;;  %v2243_v10 = vld [vmem:[#allocation10 + $0x2c] ss:$16 sps:$4 sm:$0xff]  }
 0x103   : > { %2073 = vmatprep.subr.bf16.mxu1 %v2660_v0  ;;  %782 = vmatprep.subr.bf16.mxu0 %v2214_v14  ;;  %v2246_v42 = vld [vmem:[#allocation10 + $0x44] ss:$16 sps:$4 sm:$0xff]   ;;  %v2244_v43 = vld [vmem:[#allocation10 + $0x40] ss:$16 sps:$4 sm:$0xff]   ;;  %v2241_v12 = vld [vmem:[#allocation10 + $0x28] ss:$16 sps:$4 sm:$0xff]  }
 0x104   : > { %v2252_v44 = vld [vmem:[#allocation10 + $0x64] ss:$16 sps:$4 sm:$0xff]   ;;  %v2250_v45 = vld [vmem:[#allocation10 + $0x60] ss:$16 sps:$4 sm:$0xff]   ;;  %v2249_v13 = vld [vmem:[#allocation10 + $0x4c] ss:$16 sps:$4 sm:$0xff]  }
 0x105   : > { %783 = vmatpush1.bf16.msra.mxu0 %v2216_v15  ;;  %v2258_v46 = vld [vmem:[#allocation10 + $0x84] ss:$16 sps:$4 sm:$0xff]   ;;  %v2256_v47 = vld [vmem:[#allocation10 + $0x80] ss:$16 sps:$4 sm:$0xff]   ;;  %v2247_v14 = vld [vmem:[#allocation10 + $0x48] ss:$16 sps:$4 sm:$0xff]  }
 0x106   : > { %2074 = vmatpush3.bf16.msra.mxu1 %v2205_v7  ;;  %784 = vmatprep.subr.bf16.mxu0 %v2217_v16  ;;  %v2264_v48 = vld [vmem:[#allocation10 + $0xa4] ss:$16 sps:$4 sm:$0xff]   ;;  %v2262_v49 = vld [vmem:[#allocation10 + $0xa0] ss:$16 sps:$4 sm:$0xff]   ;;  %v2255_v15 = vld [vmem:[#allocation10 + $0x6c] ss:$16 sps:$4 sm:$0xff]  }
 0x107   : > { %2075 = vmatprep.subr.bf16.mxu1 %v2660_v0  ;;  %v2270_v50 = vld [vmem:[#allocation10 + $0xc4] ss:$16 sps:$4 sm:$0xff]   ;;  %v2268_v51 = vld [vmem:[#allocation10 + $0xc0] ss:$16 sps:$4 sm:$0xff]   ;;  %v2253_v16 = vld [vmem:[#allocation10 + $0x68] ss:$16 sps:$4 sm:$0xff]  }
 0x108   : > { %v2276_v52 = vld [vmem:[#allocation10 + $0xe4] ss:$16 sps:$4 sm:$0xff]   ;;  %v2274_v53 = vld [vmem:[#allocation10 + $0xe0] ss:$16 sps:$4 sm:$0xff]   ;;  %v2315_v36 = vld [vmem:[#allocation10 + $0x1ac] ss:$16 sps:$4 sm:$0xff]  }
 0x109   : > { %785 = vmatpush1.bf16.msra.mxu0 %v2219_v17  ;;  %v2282_v54 = vld [vmem:[#allocation10 + $0x104] ss:$16 sps:$4 sm:$0xff]   ;;  %v2280_v55 = vld [vmem:[#allocation10 + $0x100] ss:$16 sps:$4 sm:$0xff]   ;;  %v2261_v17 = vld [vmem:[#allocation10 + $0x8c] ss:$16 sps:$4 sm:$0xff]  }
 0x10a   : > { %2076 = vmatpush3.bf16.msra.mxu1 %v2206_v8  ;;  %786 = vmatprep.subr.bf16.mxu0 %v2220_v18  ;;  %v2288_v56 = vld [vmem:[#allocation10 + $0x124] ss:$16 sps:$4 sm:$0xff]   ;;  %v2286_v57 = vld [vmem:[#allocation10 + $0x120] ss:$16 sps:$4 sm:$0xff]   ;;  %v2259_v18 = vld [vmem:[#allocation10 + $0x88] ss:$16 sps:$4 sm:$0xff]  }
 0x10b   : > { %2077 = vmatprep.subr.bf16.mxu1 %v2660_v0  ;;  %v2294_v58 = vld [vmem:[#allocation10 + $0x144] ss:$16 sps:$4 sm:$0xff]   ;;  %v2292_v59 = vld [vmem:[#allocation10 + $0x140] ss:$16 sps:$4 sm:$0xff]   ;;  %v1880_v0 = vld [vmem:[#allocation7] ss:$0 sm:$0xff] }
 0x10c   : > { %v2300_v60 = vld [vmem:[#allocation10 + $0x164] ss:$16 sps:$4 sm:$0xff]   ;;  %v2298_v61 = vld [vmem:[#allocation10 + $0x160] ss:$16 sps:$4 sm:$0xff]   ;;  %s3105_s22 = smov (!%p500_p10, %s1874_s22), 3 }
 0x10d   : > { %787 = vmatpush1.bf16.msra.mxu0 %v2222_v19  ;;  %v2306_v62 = vld [vmem:[#allocation10 + $0x184] ss:$16 sps:$4 sm:$0xff]   ;;  %v2304_v63 = vld [vmem:[#allocation10 + $0x180] ss:$16 sps:$4 sm:$0xff]   ;;  %v2267_v19 = vld [vmem:[#allocation10 + $0xac] ss:$16 sps:$4 sm:$0xff]  }
 0x10e   : > { %2078 = vmatpush3.bf16.msra.mxu1 %v2207_v9  ;;  %788 = vmatprep.subr.bf16.mxu0 %v2223_v20  ;;  %v2235_v9 = vld [vmem:[#allocation10 + $0x8] ss:$16 sps:$4 sm:$0xff]   ;;  %s1875_s28 = sshll.u32 %s3105_s22, 2 }
 0x10f   : > { %1235 = vmatprep.subr.bf16.mxu1 %v2234_v38  ;;  %v2265_v20 = vld [vmem:[#allocation10 + $0xa8] ss:$16 sps:$4 sm:$0xff]   ;;  %s503_s17 = scalar_lea.vmem %s3099_s27, %s1875_s28 }
 0x110   : > { %v2313_v38 = vld [vmem:[#allocation10 + $0x1a8] ss:$16 sps:$4 sm:$0xff]  }
 0x111   : > { %789 = vmatpush1.bf16.msra.mxu0 %v2225_v21  ;;  %v2273_v21 = vld [vmem:[#allocation10 + $0xcc] ss:$16 sps:$4 sm:$0xff]  }
 0x112   : > { %790 = vmatprep.subr.bf16.mxu0 %v2226_v32  ;;  %v2301_v32 = vld [vmem:[#allocation10 + $0x168] ss:$16 sps:$4 sm:$0xff]  }
 0x115   : > { %791 = vmatpush1.bf16.msra.mxu0 %v2228_v33  ;;  %v2309_v33 = vld [vmem:[#allocation10 + $0x18c] ss:$16 sps:$4 sm:$0xff]  }
 0x116   : > { %792 = vmatprep.subr.bf16.mxu0 %v2229_v34  ;;  %v2307_v34 = vld [vmem:[#allocation10 + $0x188] ss:$16 sps:$4 sm:$0xff]  }
 0x119   : > { %793 = vmatpush1.bf16.msra.mxu0 %v2231_v35  ;;  %v2312_v35 = vld [vmem:[#allocation10 + $0x1a4] ss:$16 sps:$4 sm:$0xff]  }
 0x11a   : > { %1278 = vmatprep.subr.bf16.mxu0 %v2237_v39  ;;  %v2318_v39 = vld [vmem:[#allocation10 + $0x1c4] ss:$16 sps:$4 sm:$0xff]  }
 0x1d4   : > { %v571_v23 = vpop.f32.mrb[0].mxu1 }
 0x1d5   : > { %v2069_v24 = vpop.f32.mrb[1].mxu1  ;;  %v572_v26 = vadd.f32 %v1876_v22, %v571_v23  ;;  %v2279_v23 = vld [vmem:[#allocation10 + $0xec] ss:$16 sps:$4 sm:$0xff]  }
 0x1d6   : > { %v574_v25 = vpop.f32.mrb[2].mxu1  ;;  %v2277_v24 = vld [vmem:[#allocation10 + $0xe8] ss:$16 sps:$4 sm:$0xff]  }
 0x1d7   : > { %v575_v27 = vadd.f32 %v1876_v22, %v574_v25  ;;  %v2070_v28 = vpop.f32.mrb[3].mxu1  ;;  %v2271_v22 = vld [vmem:[#allocation10 + $0xc8] ss:$16 sps:$4 sm:$0xff]   ;;  %v2285_v25 = vld [vmem:[#allocation10 + $0x10c] ss:$16 sps:$4 sm:$0xff]  }
 0x1d8   : > { %v2289_v28 = vld [vmem:[#allocation10 + $0x128] ss:$16 sps:$4 sm:$0xff]  }
 0x1d9   : > { %v578_v29 = vpack.c.bf16 %v575_v27, %v572_v26  ;;  %v2283_v26 = vld [vmem:[#allocation10 + $0x108] ss:$16 sps:$4 sm:$0xff]   ;;  %v2291_v27 = vld [vmem:[#allocation10 + $0x12c] ss:$16 sps:$4 sm:$0xff]  }
 0x1db   : > { %vm579_vm2 = vcmp.ge.bf16.partialorder %v578_v29, 0  ;;  %v580_v30 = vmul.bf16 1009007652, %v578_v29 }
 0x1dd   : > { %v581_v31 = vsel %vm579_vm2, %v578_v29, %v580_v30  ;;  %v2297_v29 = vld [vmem:[#allocation10 + $0x14c] ss:$16 sps:$4 sm:$0xff]   ;;  %v2295_v30 = vld [vmem:[#allocation10 + $0x148] ss:$16 sps:$4 sm:$0xff]  }
 0x1de   : > { %2080 = vmatmul.mubr.msk.bf16.vlgmr.msra.gmra.mrb[4].mxu1 %vm621_vm3, %v581_v31  ;;  %v2303_v31 = vld [vmem:[#allocation10 + $0x16c] ss:$16 sps:$4 sm:$0xff]  }
 0x1df   : > { %1236 = vmatpush1.bf16.msra.mxu1 %v2232_v37  ;;  %v2310_v37 = vld [vmem:[#allocation10 + $0x1a0] ss:$16 sps:$4 sm:$0xff]  }
 0x1e0   : > { %1237 = vmatprep.subr.bf16.mxu1 %v2240_v40  ;;  %v2321_v40 = vld [vmem:[#allocation10 + $0x1cc] ss:$16 sps:$4 sm:$0xff]  }
 0x1e3   : > { %1238 = vmatpush1.bf16.msra.mxu1 %v2238_v41  ;;  %v2316_v41 = vld [vmem:[#allocation10 + $0x1c0] ss:$16 sps:$4 sm:$0xff]  }
 0x1e4   : > { %1239 = vmatprep.subr.bf16.mxu1 %v2246_v42  ;;  %v2319_v42 = vld [vmem:[#allocation10 + $0x1c8] ss:$16 sps:$4 sm:$0xff]  }
 0x1e7   : > { %1240 = vmatpush1.bf16.msra.mxu1 %v2244_v43  ;;  %v2324_v43 = vld [vmem:[#allocation10 + $0x1e4] ss:$16 sps:$4 sm:$0xff]  }
 0x1e8   : > { %1241 = vmatprep.subr.bf16.mxu1 %v2252_v44  ;;  %v2327_v44 = vld [vmem:[#allocation10 + $0x1ec] ss:$16 sps:$4 sm:$0xff]  }
 0x1eb   : > { %1242 = vmatpush1.bf16.msra.mxu1 %v2250_v45  ;;  %v2322_v45 = vld [vmem:[#allocation10 + $0x1e0] ss:$16 sps:$4 sm:$0xff]  }
 0x1ec   : > { %1243 = vmatprep.subr.bf16.mxu1 %v2258_v46  ;;  %v2325_v46 = vld [vmem:[#allocation10 + $0x1e8] ss:$16 sps:$4 sm:$0xff]  }
 0x1ef   : > { %1244 = vmatpush1.bf16.msra.mxu1 %v2256_v47  ;;  %v2328_v47 = vld [vmem:[#allocation12 + $0x40] sm:$0xff]  }
 0x1f0   : > { %1245 = vmatprep.subr.bf16.mxu1 %v2264_v48  ;;  %v2329_v48 = vld [vmem:[#allocation12 + $0xc0] sm:$0xff]  }
 0x1f3   : > { %1246 = vmatpush1.bf16.msra.mxu1 %v2262_v49  ;;  %v688_v49 = vlaneseq }
 0x1f4   : > { %1247 = vmatprep.subr.bf16.mxu1 %v2270_v50 }
 0x1f5   : > { %v3017_v50 = vshrl.u32 %v688_v49, 7 }
 0x1f7   : > { %1248 = vmatpush1.bf16.msra.mxu1 %v2268_v51  ;;  %v690_v51 = vsub.s32 0, %v3017_v50 }
 0x1f8   : > { %1249 = vmatprep.subr.bf16.mxu1 %v2276_v52  ;;  %v686_v52 = vld [vmem:[%s3066_s6] sm:$0x3] }
 0x1fb   : > { %1250 = vmatpush1.bf16.msra.mxu1 %v2274_v53  ;;  %v694_v53 = vsub.s32 1, %v3017_v50 }
 0x1fc   : > { %1251 = vmatprep.subr.bf16.mxu1 %v2282_v54  ;;  %v691_v54 = vrot.slane %v686_v52, %v690_v51 }
 0x1ff   : > { %1252 = vmatpush1.bf16.msra.mxu1 %v2280_v55 }
 0x200   : > { %1253 = vmatprep.subr.bf16.mxu1 %v2288_v56  ;;  %v695_v56 = vrot.slane %v686_v52, %v694_v53 }
 0x203   : > { %1254 = vmatpush1.bf16.msra.mxu1 %v2286_v57 }
 0x204   : > { %1255 = vmatprep.subr.bf16.mxu1 %v2294_v58 }
 0x207   : > { %1256 = vmatpush1.bf16.msra.mxu1 %v2292_v59 }
 0x208   : > { %1257 = vmatprep.subr.bf16.mxu1 %v2300_v60 }
 0x20b   : > { %1258 = vmatpush1.bf16.msra.mxu1 %v2298_v61 }
 0x20c   : > { %1259 = vmatprep.subr.bf16.mxu1 %v2306_v62 }
 0x20f   : > { %1260 = vmatpush1.bf16.msra.mxu1 %v2304_v63 }
 0x210   : > { %1261 = vmatprep.subr.bf16.mxu1 %v2312_v35  ;;  %v2359_v35 = vld [vmem:[#allocation12 + $0xb8] sm:$0xff]  }
 0x213   : > { %1262 = vmatpush1.bf16.msra.mxu1 %v2310_v37  ;;  %v893_v37 = vld [vmem:[%s3068_s8] sm:$0xf] }
 0x214   : > { %1263 = vmatprep.subr.bf16.mxu1 %v2318_v39  ;;  %v898_v39 = vrot.slane %v893_v37, %v690_v51 }
 0x217   : > { %1264 = vmatpush1.bf16.msra.mxu1 %v2316_v41 }
 0x218   : > { %1265 = vmatprep.subr.bf16.mxu1 %v2324_v43  ;;  %v902_v43 = vrot.slane %v893_v37, %v694_v53 }
 0x21b   : > { %1266 = vmatpush1.bf16.msra.mxu1 %v2322_v45 }
 0x21c   : > { %2019 = vmatprep.subr.bf16.mxu1 %v2328_v47 }
 0x2b1   : > { %v659_v1 = vpop.f32.mrb[4].mxu1 }
 0x2b2   : > { %v2081_v2 = vpop.f32.mrb[5].mxu1  ;;  %v660_v4 = vadd.f32 %v1880_v0, %v659_v1 }
 0x2b3   : > { %v662_v3 = vpop.f32.mrb[6].mxu1 }
 0x2b4   : > { %v663_v5 = vadd.f32 %v1880_v0, %v662_v3  ;;  %v2082_v6 = vpop.f32.mrb[7].mxu1 }
 0x2b6   : > { %v666_v7 = vpack.c.bf16 %v663_v5, %v660_v4  ;;  %v2330_v4 = vld [vmem:[#allocation12] sm:$0xff]  }
 0x2b7   : > { %v2331_v5 = vld [vmem:[#allocation12 + $0x80] sm:$0xff]  }
 0x2b8   : > { %vm667_vm4 = vcmp.ge.bf16.partialorder %v666_v7, 0  ;;  %v668_v8 = vmul.bf16 1009007652, %v666_v7 }
 0x2ba   : > { %v669_v11 = vsel %vm667_vm4, %v666_v7, %v668_v8  ;;  %v2332_v7 = vld [vmem:[#allocation12 + $0x48] sm:$0xff]  }
 0x2bb   : > { %811 = vmatmul.mubr.bf16.vlgmr.msra.gmra.mrb[0].mxu0 %v669_v11  ;;  %v2333_v8 = vld [vmem:[#allocation12 + $0xc8] sm:$0xff]  }
 0x2bc   : > { %1279 = vmatpush1.bf16.msra.mxu0 %v2235_v9  ;;  %v2335_v11 = vld [vmem:[#allocation12 + $0x88] sm:$0xff]  }
 0x2bd   : > { %1280 = vmatprep.subr.bf16.mxu0 %v2243_v10  ;;  %v2334_v10 = vld [vmem:[#allocation12 + $0x8] sm:$0xff]  }
 0x2c0   : > { %1281 = vmatpush1.bf16.msra.mxu0 %v2241_v12  ;;  %v2336_v12 = vld [vmem:[#allocation12 + $0x50] sm:$0xff]  }
 0x2c1   : > { %1282 = vmatprep.subr.bf16.mxu0 %v2249_v13  ;;  %v2337_v13 = vld [vmem:[#allocation12 + $0xd0] sm:$0xff]  }
 0x2c4   : > { %1283 = vmatpush1.bf16.msra.mxu0 %v2247_v14  ;;  %v2338_v14 = vld [vmem:[#allocation12 + $0x10] sm:$0xff]  }
 0x2c5   : > { %1284 = vmatprep.subr.bf16.mxu0 %v2255_v15  ;;  %v2339_v15 = vld [vmem:[#allocation12 + $0x90] sm:$0xff]  }
 0x2c8   : > { %1285 = vmatpush1.bf16.msra.mxu0 %v2253_v16  ;;  %v2340_v16 = vld [vmem:[#allocation12 + $0x58] sm:$0xff]  }
 0x2c9   : > { %1286 = vmatprep.subr.bf16.mxu0 %v2261_v17  ;;  %v2341_v17 = vld [vmem:[#allocation12 + $0xd8] sm:$0xff]  }
 0x2cc   : > { %1287 = vmatpush1.bf16.msra.mxu0 %v2259_v18  ;;  %v2342_v18 = vld [vmem:[#allocation12 + $0x18] sm:$0xff]  }
 0x2cd   : > { %1288 = vmatprep.subr.bf16.mxu0 %v2267_v19  ;;  %v2343_v19 = vld [vmem:[#allocation12 + $0x98] sm:$0xff]  }
 0x2d0   : > { %1289 = vmatpush1.bf16.msra.mxu0 %v2265_v20  ;;  %v2344_v20 = vld [vmem:[#allocation12 + $0x60] sm:$0xff]  }
 0x2d1   : > { %1290 = vmatprep.subr.bf16.mxu0 %v2273_v21  ;;  %v2345_v21 = vld [vmem:[#allocation12 + $0xe0] sm:$0xff]  }
 0x2d4   : > { %1291 = vmatpush1.bf16.msra.mxu0 %v2271_v22  ;;  %v2346_v22 = vld [vmem:[#allocation12 + $0x20] sm:$0xff]  }
 0x2d5   : > { %1292 = vmatprep.subr.bf16.mxu0 %v2279_v23  ;;  %v2347_v23 = vld [vmem:[#allocation12 + $0xa0] sm:$0xff]  }
 0x2d8   : > { %1293 = vmatpush1.bf16.msra.mxu0 %v2277_v24  ;;  %v2348_v24 = vld [vmem:[#allocation12 + $0x68] sm:$0xff]  }
 0x2d9   : > { %1294 = vmatprep.subr.bf16.mxu0 %v2285_v25  ;;  %v2349_v25 = vld [vmem:[#allocation12 + $0xe8] sm:$0xff]  }
 0x2dc   : > { %1295 = vmatpush1.bf16.msra.mxu0 %v2283_v26  ;;  %v2350_v26 = vld [vmem:[#allocation12 + $0x28] sm:$0xff]  }
 0x2dd   : > { %1296 = vmatprep.subr.bf16.mxu0 %v2291_v27  ;;  %v2351_v27 = vld [vmem:[#allocation12 + $0xa8] sm:$0xff]  }
 0x2e0   : > { %1297 = vmatpush1.bf16.msra.mxu0 %v2289_v28  ;;  %v2352_v28 = vld [vmem:[#allocation12 + $0x70] sm:$0xff]  }
 0x2e1   : > { %1298 = vmatprep.subr.bf16.mxu0 %v2297_v29  ;;  %v2353_v29 = vld [vmem:[#allocation12 + $0xf0] sm:$0xff]  }
 0x2e4   : > { %1299 = vmatpush1.bf16.msra.mxu0 %v2295_v30  ;;  %v2354_v30 = vld [vmem:[#allocation12 + $0x30] sm:$0xff]  }
 0x2e5   : > { %1300 = vmatprep.subr.bf16.mxu0 %v2303_v31  ;;  %v2355_v31 = vld [vmem:[#allocation12 + $0xb0] sm:$0xff]  }
 0x2e8   : > { %1301 = vmatpush1.bf16.msra.mxu0 %v2301_v32  ;;  %v2356_v32 = vld [vmem:[#allocation12 + $0x78] sm:$0xff]  }
 0x2e9   : > { %1302 = vmatprep.subr.bf16.mxu0 %v2309_v33  ;;  %v2357_v33 = vld [vmem:[#allocation12 + $0xf8] sm:$0xff]  }
 0x2ec   : > { %1303 = vmatpush1.bf16.msra.mxu0 %v2307_v34  ;;  %v2358_v34 = vld [vmem:[#allocation12 + $0x38] sm:$0xff]  }
 0x2ed   : > { %1304 = vmatprep.subr.bf16.mxu0 %v2315_v36  ;;  %v905_v36 = vsub.s32 2, %v3017_v50 }
 0x2f0   : > { %1305 = vmatpush1.bf16.msra.mxu0 %v2313_v38  ;;  %v909_v38 = vsub.s32 3, %v3017_v50 }
 0x2f1   : > { %1306 = vmatprep.subr.bf16.mxu0 %v2321_v40  ;;  %v906_v40 = vrot.slane %v893_v37, %v905_v36 }
 0x2f4   : > { %1307 = vmatpush1.bf16.msra.mxu0 %v2319_v42 }
 0x2f5   : > { %1308 = vmatprep.subr.bf16.mxu0 %v2327_v44  ;;  %v910_v44 = vrot.slane %v893_v37, %v909_v38 }
 0x2f8   : > { %1309 = vmatpush1.bf16.msra.mxu0 %v2325_v46 }
 0x2f9   : > { %2041 = vmatprep.subr.bf16.mxu0 %v2329_v48 }
 0x38e   : > { %v812_v55 = vpop.f32.mrb[0].mxu0 }
 0x38f   : > { %v814_v57 = vpop.f32.mrb[1].mxu0  ;;  %v813_v59 = vadd.f32 %v812_v55, %v691_v54 }
 0x390   : > { %v816_v58 = vpop.f32.mrb[2].mxu0  ;;  %v815_v62 = vadd.f32 %v814_v57, %v695_v56 }
 0x391   : > { %v817_v60 = vadd.f32 %v816_v58, %v691_v54  ;;  %v818_v61 = vpop.f32.mrb[3].mxu0 }
 0x392   : > { %v819_v63 = vadd.f32 %v818_v61, %v695_v56 }
 0x393   : > { %v821_v0 = vpack.c.bf16 %v817_v60, %v813_v59 }
 0x394   : > { %v822_v1 = vpack.c.bf16 %v819_v63, %v815_v62 }
 0x395   : > { %v825_v2 = vmul.bf16 1009007652, %v821_v0  ;;  %vm823_vm6 = vcmp.ge.bf16.partialorder %v821_v0, 0 }
 0x396   : > { %vm824_vm5 = vcmp.ge.bf16.partialorder %v822_v1, 0  ;;  %v826_v3 = vmul.bf16 1009007652, %v822_v1 }
 0x397   : > { %v827_v9 = vsel %vm823_vm6, %v821_v0, %v825_v2 }
 0x398   : > { %v828_v6 = vsel %vm824_vm5, %v822_v1, %v826_v3 }
 0x399   : > { %1267 = vmatprep.mubr.bf16.mxu1 %v828_v6  ;;  %1310 = vmatprep.mubr.bf16.mxu0 %v828_v6 }
 0x39a   : > { %1268 = vmatmul.mubr.bf16.vlgmr.msra.gmra.mrb[8].mxu1 %v827_v9  ;;  %1311 = vmatmul.mubr.bf16.vlgmr.msra.gmra.mrb[4].mxu0 %v827_v9 }
 0x39b   : > { %2020 = vmatpush3.bf16.msra.mxu1 %v2330_v4  ;;  %2042 = vmatpush3.bf16.msra.mxu0 %v2331_v5 }
 0x39c   : > { %2021 = vmatprep.subr.bf16.mxu1 %v2332_v7  ;;  %2043 = vmatprep.subr.bf16.mxu0 %v2333_v8 }
 0x39f   : > { %2022 = vmatpush3.bf16.msra.mxu1 %v2334_v10  ;;  %2044 = vmatpush3.bf16.msra.mxu0 %v2335_v11  ;;  %v1966_v10 = vld [vmem:[#allocation13] ss:$0 sm:$0xff] }
 0x3a0   : > { %2023 = vmatprep.subr.bf16.mxu1 %v2336_v12  ;;  %2045 = vmatprep.subr.bf16.mxu0 %v2337_v13  ;;  %v1683_v13 = vand.u32 127, %v688_v49 }
 0x3a2   : > { %vm1684_vm11 = vcmp.lt.s32.totalorder %v1683_v13, 2 }
 0x3a3   : > { %2024 = vmatpush3.bf16.msra.mxu1 %v2338_v14  ;;  %2046 = vmatpush3.bf16.msra.mxu0 %v2339_v15 }
 0x3a4   : > { %2025 = vmatprep.subr.bf16.mxu1 %v2340_v16  ;;  %2047 = vmatprep.subr.bf16.mxu0 %v2341_v17 }
 0x3a7   : > { %2026 = vmatpush3.bf16.msra.mxu1 %v2342_v18  ;;  %2048 = vmatpush3.bf16.msra.mxu0 %v2343_v19 }
 0x3a8   : > { %2027 = vmatprep.subr.bf16.mxu1 %v2344_v20  ;;  %2049 = vmatprep.subr.bf16.mxu0 %v2345_v21 }
 0x3ab   : > { %2028 = vmatpush3.bf16.msra.mxu1 %v2346_v22  ;;  %2050 = vmatpush3.bf16.msra.mxu0 %v2347_v23 }
 0x3ac   : > { %2029 = vmatprep.subr.bf16.mxu1 %v2348_v24  ;;  %2051 = vmatprep.subr.bf16.mxu0 %v2349_v25 }
 0x3af   : > { %2030 = vmatpush3.bf16.msra.mxu1 %v2350_v26  ;;  %2052 = vmatpush3.bf16.msra.mxu0 %v2351_v27 }
 0x3b0   : > { %2031 = vmatprep.subr.bf16.mxu1 %v2352_v28  ;;  %2053 = vmatprep.subr.bf16.mxu0 %v2353_v29 }
 0x3b3   : > { %2032 = vmatpush3.bf16.msra.mxu1 %v2354_v30  ;;  %2054 = vmatpush3.bf16.msra.mxu0 %v2355_v31 }
 0x3b4   : > { %2033 = vmatprep.subr.bf16.mxu1 %v2356_v32  ;;  %2055 = vmatprep.subr.bf16.mxu0 %v2357_v33 }
 0x3b7   : > { %2034 = vmatpush3.bf16.msra.mxu1 %v2358_v34  ;;  %2056 = vmatpush3.bf16.msra.mxu0 %v2359_v35 }
 0x46d   : > { %v1269_v41 = vpop.f32.mrb[8].mxu1  ;;  %v1312_v42 = vpop.f32.mrb[4].mxu0 }
 0x46e   : > { %v1271_v45 = vpop.f32.mrb[9].mxu1  ;;  %v1314_v46 = vpop.f32.mrb[5].mxu0  ;;  %v1270_v52 = vadd.f32 %v1269_v41, %v898_v39  ;;  %v1313_v54 = vadd.f32 %v1312_v42, %v906_v40 }
 0x46f   : > { %v1273_v47 = vpop.f32.mrb[10].mxu1  ;;  %v1316_v48 = vpop.f32.mrb[6].mxu0  ;;  %v1272_v59 = vadd.f32 %v1271_v45, %v902_v43  ;;  %v1315_v60 = vadd.f32 %v1314_v46, %v910_v44 }
 0x470   : > { %v1274_v55 = vadd.f32 %v1273_v47, %v898_v39  ;;  %v1317_v56 = vadd.f32 %v1316_v48, %v906_v40  ;;  %v1275_v57 = vpop.f32.mrb[11].mxu1  ;;  %v1318_v58 = vpop.f32.mrb[7].mxu0 }
 0x471   : > { %v1276_v51 = vadd.f32 %v1275_v57, %v902_v43  ;;  %v1319_v61 = vadd.f32 %v1318_v58, %v910_v44 }
 0x472   : > { %v1321_v62 = vpack.c.bf16 %v1274_v55, %v1270_v52  ;;  %v1323_v63 = vpack.c.bf16 %v1317_v56, %v1313_v54 }
 0x473   : > { %v1322_v0 = vpack.c.bf16 %v1276_v51, %v1272_v59  ;;  %v1324_v50 = vpack.c.bf16 %v1319_v61, %v1315_v60 }
 0x474   : > { %v1329_v53 = vmul.bf16 1009007652, %v1321_v62  ;;  %v1331_v1 = vmul.bf16 1009007652, %v1323_v63  ;;  %vm1325_vm7 = vcmp.ge.bf16.partialorder %v1321_v62, 0  ;;  %vm1327_vm8 = vcmp.ge.bf16.partialorder %v1323_v63, 0 }
 0x475   : > { %vm1326_vm9 = vcmp.ge.bf16.partialorder %v1322_v0, 0  ;;  %v1330_v2 = vmul.bf16 1009007652, %v1322_v0  ;;  %vm1328_vm10 = vcmp.ge.bf16.partialorder %v1324_v50, 0  ;;  %v1332_v3 = vmul.bf16 1009007652, %v1324_v50 }
 0x476   : > { %v1333_v6 = vsel %vm1325_vm7, %v1321_v62, %v1329_v53  ;;  %v1335_v7 = vsel %vm1327_vm8, %v1323_v63, %v1331_v1 }
 0x477   : > { %v1334_v4 = vsel %vm1326_vm9, %v1322_v0, %v1330_v2  ;;  %v1336_v5 = vsel %vm1328_vm10, %v1324_v50, %v1332_v3 }
 0x478   : > { %1632 = vmatprep.mubr.bf16.mxu1 %v1334_v4  ;;  %1673 = vmatprep.mubr.bf16.mxu0 %v1336_v5 }
 0x479   : > { %1633 = vmatmul.mubr.bf16.vlgmr.msra.gmra.mrb[12].mxu1 %v1333_v6  ;;  %1674 = vmatmul.mubr.bf16.vlgmr.msra.gmra.mrb[8].mxu0 %v1335_v7 }
 0x54c   : > { %v2035_v8 = vpop.f32.mrb[12].mxu1  ;;  %v2057_v9 = vpop.f32.mrb[8].mxu0 }
 0x54d   : > { %v2036_v11 = vpop.f32.mrb[13].mxu1  ;;  %v2058_v12 = vpop.f32.mrb[9].mxu0 }
 0x54e   : > { %v2037_v14 = vadd.f32 %v2036_v11, %v2035_v8  ;;  %v2059_v15 = vadd.f32 %v2058_v12, %v2057_v9  ;;  %v2038_v16 = vpop.f32.mrb[14].mxu1  ;;  %v2060_v17 = vpop.f32.mrb[10].mxu0 }
 0x54f   : > { %v2039_v18 = vpop.f32.mrb[15].mxu1  ;;  %v2061_v19 = vpop.f32.mrb[11].mxu0 }
 0x550   : > { %v1635_v20 = vadd.f32 %v2037_v14, %v1966_v10  ;;  %v2040_v21 = vadd.f32 %v2039_v18, %v2038_v16  ;;  %v2062_v22 = vadd.f32 %v2061_v19, %v2060_v17 }
 0x552   : > { %v1638_v23 = vadd.f32 %v2040_v21, %v1966_v10  ;;  %v1676_v24 = vadd.f32 %v2059_v15, %v1635_v20 }
 0x554   : > { %v1685_v25 = vsel %vm1684_vm11, %v1676_v24, -1e+30  ;;  %v1679_v26 = vadd.f32 %v2062_v22, %v1638_v23 }
 0x555   : > { %1687 = vmax.xlane.f32.xlu0 %v1685_v25 }
 0x556   : > { %v1686_v27 = vsel %vm1684_vm11, %v1679_v26, -1e+30 }
 0x559   : > { %1689 = vmax.xlane.f32.xlu0 %v1686_v27 }
 0x5e2   : > { %v1688_v49 = vpop.xlane.xlu0 %1687 }
 0x5e3   : > { %v1691_v28 = vsub.f32 %v1685_v25, %v1688_v49 }
 0x5e5   : > { %v1693_v29 = vmul.f32 1.442695, %v1691_v28 }
 0x5e6   : > { %v1690_v30 = vpop.xlane.xlu0 %1689 }
 0x5e7   : > { %2360 = vpow2.f32 %v1693_v29  ;;  %v1692_v31 = vsub.f32 %v1686_v27, %v1690_v30 }
 0x5e9   : > { %v1695_v32 = vmul.f32 1.442695, %v1692_v31 }
 0x5eb   : > { %2362 = vpow2.f32 %v1695_v32 }
 0x5f1   : > { %v2361_v33 = vpop.eup %2360 }
 0x5f2   : > { %v1697_v34 = vsel %vm1684_vm11, %v2361_v33, 0.0 }
 0x5f3   : > { %1699 = vadd.xlane.f32.xlu1 %v1697_v34 }
 0x5f5   : > { %v2363_v35 = vpop.eup %2362 }
 0x5f6   : > { %v1698_v36 = vsel %vm1684_vm11, %v2363_v35, 0.0 }
 0x5f7   : > { %1701 = vadd.xlane.f32.xlu1 %v1698_v36 }
 0x680   : > { %v1700_v37 = vpop.xlane.xlu1 %1699 }
 0x681   : > { %2364 = vrcp.f32 %v1700_v37 }
 0x684   : > { %v1702_v38 = vpop.xlane.xlu1 %1701 }
 0x685   : > { %2366 = vrcp.f32 %v1702_v38 }
 0x68b   : > { %v2365_v39 = vpop.eup %2364 }
 0x68c   : > { %v1705_v41 = vmul.f32 %v2365_v39, %v1697_v34 }
 0x68f   : > { %v2367_v40 = vpop.eup %2366 }
 0x690   : > { %v1706_v42 = vmul.f32 %v2367_v40, %v1698_v36 }
 0x692   : > { %v2009_v43 = vpack.c.bf16 %v1706_v42, %v1705_v41 }
 0x694   : > { %2010 = vst [vmem:[%s503_s17] sm:$0xff] %v2009_v43  }
 0x695 PF: > { %p25_p5 = scmp.ge.s32.totalorder %s2921_s21, 4   ;;  %s3100_s17 = smov %s2636_s18 }
 0x696   : > { %s3101_s18 = smov %s2640_s19  ;;  %s3102_s19 = smov %s2932_s7 }
 0x697   : > { %s3103_s20 = smov %s2921_s21  ;;  %27 = sbr.rel (!%p25_p5) target bundleno = 13 (0xd), region = 132 }
 0x69e   :  { %1739 = vsyncpa [#allocation3], 1 }
 0x69f   :  { %1741 = vsyncpa [#allocation3 + $0x1], 1 }
 0x6a0   :  { %1742 = vsyncpa [#allocation5], 1 }
 0x6a1   :  { %1743 = vsyncpa [#allocation8], 1 }
 0x6a2   :  { %1744 = vsyncpa [#allocation11], 1 }
 0x6a3   :  { %1745 = vsyncpa [#allocation14], 1 }

</bundles_post_ra>
